<compile_context>
chip_gen: v6e
topology: v6e:2x2x1
jax: 0.10.0
libtpu: 0.0.40
codegen_flags: <defaults>
</compile_context>

<pallas_src>
import jax
import jax.numpy as jnp
from jax.experimental import pallas as pl
from jax.experimental.pallas import tpu as pltpu


def _round_up(x, m):
    return (x + m - 1) // m * m


def _fcn_fused_kernel(x_ref, w_ref, b_ref, y_ref):
    # x_ref: (tm, K_pad)  w_ref: (K_pad, N_pad)  b_ref: (1, N_pad)  y_ref: (tm, N_pad)
    y = jnp.dot(x_ref[...], w_ref[...], preferred_element_type=jnp.float32)
    y_ref[...] = (y + b_ref[...]).astype(y_ref.dtype)


def _build_call(tm, m_pad, k_pad, n_pad, out_dtype, vmem_limit, cost,
                single_buffer_weights):
    const_kwargs = {}
    if single_buffer_weights:
        # Weights/bias have a constant block index across the grid; one VMEM
        # buffer suffices (default double-buffering wastes VMEM on them).
        const_kwargs = dict(pipeline_mode=pl.Buffered(1))
    return pl.pallas_call(
        _fcn_fused_kernel,
        out_shape=jax.ShapeDtypeStruct((m_pad, n_pad), out_dtype),
        grid_spec=pltpu.PrefetchScalarGridSpec(
            num_scalar_prefetch=0,
            grid=(m_pad // tm,),
            in_specs=[
                pl.BlockSpec((tm, k_pad), lambda i: (i, 0)),              # X tile
                pl.BlockSpec((k_pad, n_pad), lambda i: (0, 0), **const_kwargs),  # W (full)
                pl.BlockSpec((1, n_pad), lambda i: (0, 0), **const_kwargs),      # bias
            ],
            out_specs=pl.BlockSpec((tm, n_pad), lambda i: (i, 0)),
        ),
        compiler_params=pltpu.CompilerParams(
            dimension_semantics=("parallel",),   # v7x: shard M over both TCs
            vmem_limit_bytes=vmem_limit,
        ),
        cost_estimate=cost,
    )


def fcn_forward(out, wc, bc, wa, ba, n_args, args_dim_p1, *,
                tm_max=512, use_bf16=False):
    """Fused FCN forward.

    out: (S, N, d_model); wc: (d_model, n_commands); bc: (n_commands,);
    wa: (d_model, n_args*args_dim_p1); ba: (n_args*args_dim_p1,)
    Returns (command_logits (S,N,n_commands),
             args_logits    (S,N,n_args,args_dim_p1)).
    """
    S, N, d_model = out.shape
    M = S * N
    n_commands = wc.shape[1]
    args_out = wa.shape[1]
    n_total = n_commands + args_out

    out_dtype = out.dtype
    compute_dtype = jnp.bfloat16 if use_bf16 else out_dtype
    sublane = 16 if compute_dtype == jnp.bfloat16 else 8
    itm = jnp.dtype(compute_dtype).itemsize
    ito = jnp.dtype(out_dtype).itemsize

    # ---- padded, lane/sublane-aligned geometry ---------------------------
    k_pad = _round_up(d_model, 128)
    n_pad = _round_up(n_total, 128)

    def footprint(tm):
        return (2 * tm * k_pad * itm        # X tile, double-buffered
                + 2 * tm * n_pad * ito      # Y tile, double-buffered
                + 2 * k_pad * n_pad * itm   # W (worst case double-buffered)
                + 2 * n_pad * 4)            # bias

    VMEM_BUDGET = 32 << 20  # conservative: fits every generation incl. v7x
    tm = min(_round_up(tm_max, sublane), _round_up(M, sublane))
    while tm > sublane and footprint(tm) > VMEM_BUDGET:
        tm = max(sublane, _round_up(tm // 2, sublane))
    m_pad = _round_up(M, tm)

    vmem_limit = min(max(int(1.25 * footprint(tm)) + (4 << 20), 32 << 20),
                     48 << 20)

    # ---- glue: flatten, fuse heads, zero-pad ------------------------------
    x = out.reshape(M, d_model).astype(compute_dtype)
    x = jnp.pad(x, ((0, m_pad - M), (0, k_pad - d_model)))

    w = jnp.concatenate([wc, wa], axis=1).astype(compute_dtype)
    w = jnp.pad(w, ((0, k_pad - d_model), (0, n_pad - n_total)))

    b = jnp.concatenate([bc, ba]).astype(jnp.float32).reshape(1, n_total)
    b = jnp.pad(b, ((0, 0), (0, n_pad - n_total)))

    cost = pl.CostEstimate(
        flops=2 * m_pad * k_pad * n_pad,
        transcendentals=0,
        bytes_accessed=(x.size * itm + w.size * itm + b.size * 4
                        + m_pad * n_pad * ito),
    )

    try:
        y = _build_call(tm, m_pad, k_pad, n_pad, out_dtype, vmem_limit, cost,
                        single_buffer_weights=True)(x, w, b)
    except Exception:
        # pl.Buffered(1) pipeline_mode unsupported on this JAX version:
        # fall back to default double-buffered weight/bias blocks.
        y = _build_call(tm, m_pad, k_pad, n_pad, out_dtype, vmem_limit, cost,
                        single_buffer_weights=False)(x, w, b)

    y = y[:M]
    command_logits = y[:, :n_commands].reshape(S, N, n_commands)
    args_logits = y[:, n_commands:n_total].reshape(S, N, n_args, args_dim_p1)
    return command_logits, args_logits


def init_fcn_params(key, d_model, n_commands, n_args, args_dim=256,
                    dtype=jnp.float32):
    """Deterministic synthetic params; shapes match the PyTorch module."""
    args_dim_p1 = args_dim + 1
    k1, k2, k3, k4 = jax.random.split(key, 4)
    scale = 1.0 / jnp.sqrt(d_model)
    wc = jax.random.uniform(k1, (d_model, n_commands), dtype, -scale, scale)
    bc = jax.random.uniform(k2, (n_commands,), dtype, -scale, scale)
    wa = jax.random.uniform(k3, (d_model, n_args * args_dim_p1), dtype,
                            -scale, scale)
    ba = jax.random.uniform(k4, (n_args * args_dim_p1,), dtype, -scale, scale)
    return wc, bc, wa, ba, args_dim_p1


if __name__ == "__main__":
    # Small shapes consistent with the module's forward: out is (S, N, d_model)
    S, N, d_model = 8, 2, 32
    n_commands, n_args, args_dim = 6, 4, 256

    key = jax.random.PRNGKey(0)
    k_x, k_p = jax.random.split(key)
    out = jax.random.normal(k_x, (S, N, d_model), jnp.float32)
    wc, bc, wa, ba, args_dim_p1 = init_fcn_params(
        k_p, d_model, n_commands, n_args, args_dim)

    # Pure-JAX reference (same math as the two nn.Linear heads).
    x2 = out.reshape(S * N, d_model)
    cmd_ref = (x2 @ wc + bc).reshape(S, N, n_commands)
    args_ref = (x2 @ wa + ba).reshape(S, N, n_args, args_dim_p1)

    # f32 path (exact semantics).
    cmd_logits, args_logits = fcn_forward(
        out, wc, bc, wa, ba, n_args, args_dim_p1)
    jax.block_until_ready((cmd_logits, args_logits))
    assert cmd_logits.shape == (S, N, n_commands)
    assert args_logits.shape == (S, N, n_args, args_dim_p1)
    assert jnp.allclose(cmd_logits, cmd_ref, atol=1e-5, rtol=1e-5)
    assert jnp.allclose(args_logits, args_ref, atol=1e-5, rtol=1e-5)

    # bf16 MXU-operand path (f32 accumulation), looser tolerance.
    cmd_bf, args_bf = fcn_forward(
        out, wc, bc, wa, ba, n_args, args_dim_p1, use_bf16=True)
    jax.block_until_ready((cmd_bf, args_bf))
    assert jnp.allclose(cmd_bf, cmd_ref, atol=1e-1, rtol=1e-1)
    assert jnp.allclose(args_bf, args_ref, atol=1e-1, rtol=1e-1)

    print("KERNEL_OK")
</pallas_src>

<mosaic_0001>
module attributes {stable_mosaic.version = 11 : i64} {
  func.func @_fcn_fused_kernel(%arg0: i32, %arg1: memref<16x128xf32, #tpu.memory_space<vmem>>, %arg2: memref<128x1152xf32, #tpu.memory_space<vmem>>, %arg3: memref<1x1152xf32, #tpu.memory_space<vmem>>, %arg4: memref<16x1152xf32, #tpu.memory_space<vmem>>) attributes {dimension_semantics = [#tpu.dimension_semantics<parallel>], iteration_bounds = array<i64: 1>, scalar_prefetch = 0 : i64, scratch_operands = 0 : i64, tpu.core_type = #tpu.core_type<tc>, window_params = [{transform_indices = @transform_0, window_bounds = array<i64: 16, 128>}, {pipeline_mode = #tpu.pipeline_mode<synchronous>, transform_indices = @transform_1, window_bounds = array<i64: 128, 1152>}, {pipeline_mode = #tpu.pipeline_mode<synchronous>, transform_indices = @transform_2, window_bounds = array<i64: 1, 1152>}, {transform_indices = @transform_3, window_bounds = array<i64: 16, 1152>}]} {
    %c0 = arith.constant 0 : index
    %c0_0 = arith.constant 0 : index
    %0 = vector.load %arg1[%c0, %c0_0] : memref<16x128xf32, #tpu.memory_space<vmem>>, vector<16x128xf32>
    %c0_1 = arith.constant 0 : index
    %c0_2 = arith.constant 0 : index
    %1 = vector.load %arg2[%c0_1, %c0_2] : memref<128x1152xf32, #tpu.memory_space<vmem>>, vector<128x1152xf32>
    %cst = arith.constant dense<0.000000e+00> : vector<16x1152xf32>
    %2 = tpu.matmul %0, %1, %cst {dimension_numbers = #tpu.dot_dimension_numbers<[1], [0], [0], [1], [0, 0, 1, 1], [], []>} : vector<16x128xf32>, vector<128x1152xf32>, vector<16x1152xf32> -> vector<16x1152xf32>
    %c0_3 = arith.constant 0 : index
    %c0_4 = arith.constant 0 : index
    %3 = vector.load %arg3[%c0_3, %c0_4] : memref<1x1152xf32, #tpu.memory_space<vmem>>, vector<1x1152xf32>
    %4 = vector.broadcast %3 : vector<1x1152xf32> to vector<16x1152xf32>
    %5 = arith.addf %2, %4 : vector<16x1152xf32>
    %c0_5 = arith.constant 0 : index
    %c0_6 = arith.constant 0 : index
    %6 = vector.load %arg4[%c0_5, %c0_6] : memref<16x1152xf32, #tpu.memory_space<vmem>>, vector<16x1152xf32>
    tpu.vector_store %arg4[%c0_5, %c0_6], %5 {strides = array<i32>} : memref<16x1152xf32, #tpu.memory_space<vmem>>, vector<16x1152xf32>,
    return
  }
  func.func @transform_0(%arg0: i32) -> (i32, i32) {
    %c0_i32 = arith.constant 0 : i32
    %c0_i32_0 = arith.constant 0 : i32
    return %arg0, %c0_i32 : i32, i32
  }
  func.func @transform_1(%arg0: i32) -> (i32, i32) {
    %c0_i32 = arith.constant 0 : i32
    %c0_i32_0 = arith.constant 0 : i32
    %c0_i32_1 = arith.constant 0 : i32
    return %c0_i32, %c0_i32_0 : i32, i32
  }
  func.func @transform_2(%arg0: i32) -> (i32, i32) {
    %c0_i32 = arith.constant 0 : i32
    %c0_i32_0 = arith.constant 0 : i32
    %c0_i32_1 = arith.constant 0 : i32
    return %c0_i32, %c0_i32_0 : i32, i32
  }
  func.func @transform_3(%arg0: i32) -> (i32, i32) {
    %c0_i32 = arith.constant 0 : i32
    %c0_i32_0 = arith.constant 0 : i32
    return %arg0, %c0_i32 : i32, i32
  }
}

module attributes {stable_mosaic.version = 11 : i64} {
  func.func @_fcn_fused_kernel(%arg0: i32, %arg1: memref<16x128xf32, #tpu.memory_space<vmem>>, %arg2: memref<128x1152xf32, #tpu.memory_space<vmem>>, %arg3: memref<1x1152xf32, #tpu.memory_space<vmem>>, %arg4: memref<16x1152xf32, #tpu.memory_space<vmem>>) attributes {dimension_semantics = [#tpu.dimension_semantics<parallel>], iteration_bounds = array<i64: 1>, scalar_prefetch = 0 : i64, scratch_operands = 0 : i64, tpu.core_type = #tpu.core_type<tc>, window_params = [{transform_indices = @transform_0, window_bounds = array<i64: 16, 128>}, {pipeline_mode = #tpu.pipeline_mode<synchronous>, transform_indices = @transform_1, window_bounds = array<i64: 128, 1152>}, {pipeline_mode = #tpu.pipeline_mode<synchronous>, transform_indices = @transform_2, window_bounds = array<i64: 1, 1152>}, {transform_indices = @transform_3, window_bounds = array<i64: 16, 1152>}]} {
    %c0 = arith.constant 0 : index
    %c0_0 = arith.constant 0 : index
    %0 = vector.load %arg1[%c0, %c0_0] : memref<16x128xf32, #tpu.memory_space<vmem>>, vector<16x128xf32>
    %c0_1 = arith.constant 0 : index
    %c0_2 = arith.constant 0 : index
    %1 = vector.load %arg2[%c0_1, %c0_2] : memref<128x1152xf32, #tpu.memory_space<vmem>>, vector<128x1152xf32>
    %cst = arith.constant dense<0.000000e+00> : vector<16x1152xf32>
    %2 = tpu.matmul %0, %1, %cst {dimension_numbers = #tpu.dot_dimension_numbers<[1], [0], [0], [1], [0, 0, 1, 1], [], []>} : vector<16x128xf32>, vector<128x1152xf32>, vector<16x1152xf32> -> vector<16x1152xf32>
    %c0_3 = arith.constant 0 : index
    %c0_4 = arith.constant 0 : index
    %3 = vector.load %arg3[%c0_3, %c0_4] : memref<1x1152xf32, #tpu.memory_space<vmem>>, vector<1x1152xf32>
    %4 = vector.broadcast %3 : vector<1x1152xf32> to vector<16x1152xf32>
    %5 = arith.addf %2, %4 : vector<16x1152xf32>
    %c0_5 = arith.constant 0 : index
    %c0_6 = arith.constant 0 : index
    %6 = vector.load %arg4[%c0_5, %c0_6] : memref<16x1152xf32, #tpu.memory_space<vmem>>, vector<16x1152xf32>
    tpu.vector_store %arg4[%c0_5, %c0_6], %5 {strides = array<i32>} : memref<16x1152xf32, #tpu.memory_space<vmem>>, vector<16x1152xf32>,
    return
  }
  func.func @transform_0(%arg0: i32) -> (i32, i32) {
    %c0_i32 = arith.constant 0 : i32
    %c0_i32_0 = arith.constant 0 : i32
    return %arg0, %c0_i32 : i32, i32
  }
  func.func @transform_1(%arg0: i32) -> (i32, i32) {
    %c0_i32 = arith.constant 0 : i32
    %c0_i32_0 = arith.constant 0 : i32
    %c0_i32_1 = arith.constant 0 : i32
    return %c0_i32, %c0_i32_0 : i32, i32
  }
  func.func @transform_2(%arg0: i32) -> (i32, i32) {
    %c0_i32 = arith.constant 0 : i32
    %c0_i32_0 = arith.constant 0 : i32
    %c0_i32_1 = arith.constant 0 : i32
    return %c0_i32, %c0_i32_0 : i32, i32
  }
  func.func @transform_3(%arg0: i32) -> (i32, i32) {
    %c0_i32 = arith.constant 0 : i32
    %c0_i32_0 = arith.constant 0 : i32
    return %arg0, %c0_i32 : i32, i32
  }
}

</mosaic_0001>

<bundles_post_ra>
// kernel: tpu_custom_call.1
= control target key start
LH: loop header
LB: loop body
LE: loop exit
PB: predicated region body
PF: predicated region fallthrough
CT: control target
= control target key end

     0   :  { %8 = vsyncpa [#allocation3], 0  ;;  %s886_s0 = inlined_call_operand.hbm [shape: f32[16,128], index: 0, kind: input, shape index: {}]   ;;  %s887_s1 = inlined_call_operand.hbm [shape: f32[128,1152], index: 1, kind: input, shape index: {}]   ;;  %s888_s2 = inlined_call_operand.hbm [shape: f32[1,1152], index: 2, kind: input, shape index: {}]   ;;  %s889_s3 = inlined_call_operand.hbm [shape: f32[16,1152], index: 3, kind: output, shape index: {}]  }
   0x1   :  { %9 = vsyncpa [#allocation6], 0 }
   0x2   :  { %10 = vsyncpa [#allocation4], 0  ;;  %s817_s12 = smov [#allocation5]  }
   0x3   :  { %s28_s13 = sshll.u32 %s817_s12, 4  ;;  %s29_s13 = int_to_ptr.vmem [resolvable:$true] %s28_s13 }
   0x4   :  { %s739_s14 = scalar_lea.vmem %s29_s13, 18432  ;;  %p744_p1 = scmp.lt.s32.totalorder %s29_s13, %s29_s13 }
   0x5   :  { %p740_p0 = scmp.ne.s32.totalorder %s29_s13, %s739_s14  ;;  %p745_p2 = scmp.lt.s32.totalorder %s739_s14, %s739_s14 }
   0x7   :  { %p746_p3 = por %p745_p2, %p744_p1 }
   0x9   :  { %p747_p4 = pnand %p746_p3, %p740_p0 }
   0xb   :  { %750 = shalt.err (!%p747_p4)
}
   0xc   :  { %s818_s15 = smov 1152   ;;  %s819_s16 = smov 72  }
   0xd   :  { %34 = dma.hbm_to_vmem [thread:$0]  %s887_s1, 18432, %s29_s13, [#allocation6], %s818_s15, %s818_s15, %s819_s16  }
   0xe   :  { %s820_s19 = smov [#allocation2]  }
   0xf   :  { %s16_s20 = sshll.u32 %s820_s19, 4  ;;  %s17_s20 = int_to_ptr.vmem [resolvable:$true] %s16_s20 }
  0x10   :  { %s759_s21 = scalar_lea.vmem %s17_s20, 256  ;;  %p764_p6 = scmp.lt.s32.totalorder %s17_s20, %s17_s20 }
  0x11   :  { %p760_p5 = scmp.ne.s32.totalorder %s17_s20, %s759_s21  ;;  %p765_p7 = scmp.lt.s32.totalorder %s759_s21, %s759_s21 }
  0x13   :  { %p766_p8 = por %p765_p7, %p764_p6 }
  0x15   :  { %p767_p9 = pnand %p766_p8, %p760_p5 }
  0x17   :  { %770 = shalt.err (!%p767_p9)
}
  0x18   :  { %s821_s22 = smov 128   ;;  %s822_s23 = smov 8  }
  0x19   :  { %22 = dma.hbm_to_vmem [thread:$0]  %s886_s0, 256, %s17_s20, [#allocation3], %s821_s22, %s821_s22, %s822_s23  }
  0x1a   :  { %s823_s26 = smov [#allocation7]  }
  0x1b   :  { %s41_s27 = sshll.u32 %s823_s26, 4  ;;  %s42_s27 = int_to_ptr.vmem [resolvable:$true] %s41_s27 }
  0x1c   :  { %s779_s1 = scalar_lea.vmem %s42_s27, 144  ;;  %s783_s28 = scalar_lea.vmem %s42_s27, 160 }
  0x1d   :  { %p780_p10 = scmp.ne.s32.totalorder %s42_s27, %s779_s1  ;;  %p784_p11 = scmp.lt.s32.totalorder %s42_s27, %s42_s27 }
  0x1e   :  { %p785_p12 = scmp.lt.s32.totalorder %s783_s28, %s779_s1 }
  0x20   :  { %p786_p13 = por %p785_p12, %p784_p11 }
  0x22   :  { %p787_p0 = pnand %p786_p13, %p780_p10 }
  0x24   :  { %790 = shalt.err (!%p787_p0)
}
  0x25   :  { %44 = dma.hbm_to_vmem [thread:$0]  %s888_s2, 144, %s42_s27, [#allocation6]  }
  0x26   :  { %811 = dma.done.wait [#allocation3], 256  }
  0x27   :  { %812 = vsyncadd [#allocation3], 4294967040 }
  0x28   :  { %813 = dma.done.wait [#allocation6], 18576  }
  0x29   :  { %814 = vsyncadd [#allocation6], 4294948720  ;;  %v824_v0 = vmov 0.0   ;;  %v192_v1 = vld [vmem:[#allocation5 + $0x440] sm:$0xff]  ;;  %v191_v2 = vld [vmem:[#allocation5 + $0x438] sm:$0xff]  ;;  %s825_s0 = smov [#allocation8]  }
  0x2a   :  { %313 = vmatprep.mubr.f32.mxu0 %v824_v0  ;;  %390 = vmatprep.mubr.f32.mxu1 %v824_v0  ;;  %v183_v3 = vld [vmem:[#allocation5 + $0x3f8] sm:$0xff]  ;;  %v182_v4 = vld [vmem:[#allocation5 + $0x3f0] sm:$0xff]  ;;  %v173_v6 = vld [vmem:[#allocation5 + $0x3a8] sm:$0xff]  ;;  %s655_s2 = sshll.u32 %s825_s0, 4  ;;  %s656_s2 = int_to_ptr.vmem [resolvable:$true] %s655_s2 }
  0x2b   :  { %249 = vmatprep.subr.mxu0 %v192_v1  ;;  %v174_v5 = vld [vmem:[#allocation5 + $0x3b0] sm:$0xff]  ;;  %v165_v7 = vld [vmem:[#allocation5 + $0x368] sm:$0xff]  ;;  %v164_v8 = vld [vmem:[#allocation5 + $0x360] sm:$0xff]  ;;  %s791_s4 = scalar_lea.vmem %s656_s2, 2304  ;;  %p796_p2 = scmp.lt.s32.totalorder %s656_s2, %s656_s2 }
  0x2c   :  { %250 = vmatpush1.msra.mxu0 %v191_v2  ;;  %v156_v9 = vld [vmem:[#allocation5 + $0x320] sm:$0xff]  ;;  %v155_v10 = vld [vmem:[#allocation5 + $0x318] sm:$0xff]  ;;  %v146_v12 = vld [vmem:[#allocation5 + $0x2d0] sm:$0xff]  ;;  %p792_p1 = scmp.ne.s32.totalorder %s656_s2, %s791_s4  ;;  %p797_p3 = scmp.lt.s32.totalorder %s791_s4, %s791_s4 }
  0x2d   :  { %251 = vmatprep.subr.mxu0 %v183_v3  ;;  %v147_v11 = vld [vmem:[#allocation5 + $0x2d8] sm:$0xff]  ;;  %v194_v13 = vld [vmem:[#allocation5 + $0x450] sm:$0xff]  ;;  %v193_v14 = vld [vmem:[#allocation5 + $0x448] sm:$0xff] }
  0x2e   :  { %252 = vmatpush1.msra.mxu0 %v182_v4  ;;  %v138_v15 = vld [vmem:[#allocation5 + $0x290] sm:$0xff]  ;;  %326 = vmatprep.subr.mxu1 %v194_v13  ;;  %v185_v16 = vld [vmem:[#allocation5 + $0x408] sm:$0xff]  ;;  %v184_v18 = vld [vmem:[#allocation5 + $0x400] sm:$0xff]  ;;  %p798_p4 = por %p797_p3, %p796_p2 }
  0x2f   :  { %253 = vmatprep.subr.mxu0 %v174_v5  ;;  %v137_v17 = vld [vmem:[#allocation5 + $0x288] sm:$0xff]  ;;  %327 = vmatpush1.msra.mxu1 %v193_v14  ;;  %v176_v19 = vld [vmem:[#allocation5 + $0x3c0] sm:$0xff]  ;;  %v175_v21 = vld [vmem:[#allocation5 + $0x3b8] sm:$0xff] }
  0x30   :  { %254 = vmatpush1.msra.mxu0 %v173_v6  ;;  %v129_v20 = vld [vmem:[#allocation5 + $0x248] sm:$0xff]  ;;  %328 = vmatprep.subr.mxu1 %v185_v16  ;;  %v128_v22 = vld [vmem:[#allocation5 + $0x240] sm:$0xff]  ;;  %v167_v23 = vld [vmem:[#allocation5 + $0x378] sm:$0xff]  ;;  %p799_p5 = pnand %p798_p4, %p792_p1 }
  0x31   :  { %255 = vmatprep.subr.mxu0 %v165_v7  ;;  %329 = vmatpush1.msra.mxu1 %v184_v18  ;;  %v120_v24 = vld [vmem:[#allocation5 + $0x200] sm:$0xff]  ;;  %v166_v25 = vld [vmem:[#allocation5 + $0x370] sm:$0xff]  ;;  %v119_v26 = vld [vmem:[#allocation5 + $0x1f8] sm:$0xff] }
  0x32   :  { %256 = vmatpush1.msra.mxu0 %v164_v8  ;;  %330 = vmatprep.subr.mxu1 %v176_v19  ;;  %v158_v27 = vld [vmem:[#allocation5 + $0x330] sm:$0xff]  ;;  %v111_v28 = vld [vmem:[#allocation5 + $0x1b8] sm:$0xff]  ;;  %v157_v29 = vld [vmem:[#allocation5 + $0x328] sm:$0xff] }
  0x33   :  { %257 = vmatprep.subr.mxu0 %v156_v9  ;;  %331 = vmatpush1.msra.mxu1 %v175_v21  ;;  %v110_v30 = vld [vmem:[#allocation5 + $0x1b0] sm:$0xff]  ;;  %v149_v31 = vld [vmem:[#allocation5 + $0x2e8] sm:$0xff]  ;;  %v148_v33 = vld [vmem:[#allocation5 + $0x2e0] sm:$0xff] }
  0x34   :  { %258 = vmatpush1.msra.mxu0 %v155_v10  ;;  %332 = vmatprep.subr.mxu1 %v167_v23  ;;  %v102_v32 = vld [vmem:[#allocation5 + $0x170] sm:$0xff]  ;;  %v101_v34 = vld [vmem:[#allocation5 + $0x168] sm:$0xff]  ;;  %v140_v35 = vld [vmem:[#allocation5 + $0x2a0] sm:$0xff] }
  0x35   :  { %259 = vmatprep.subr.mxu0 %v147_v11  ;;  %333 = vmatpush1.msra.mxu1 %v166_v25  ;;  %v93_v36 = vld [vmem:[#allocation5 + $0x128] sm:$0xff]  ;;  %v139_v37 = vld [vmem:[#allocation5 + $0x298] sm:$0xff]  ;;  %v92_v38 = vld [vmem:[#allocation5 + $0x120] sm:$0xff] }
  0x36   :  { %260 = vmatpush1.msra.mxu0 %v146_v12  ;;  %334 = vmatprep.subr.mxu1 %v158_v27  ;;  %v131_v39 = vld [vmem:[#allocation5 + $0x258] sm:$0xff]  ;;  %v84_v40 = vld [vmem:[#allocation5 + $0xe0] sm:$0xff]  ;;  %v130_v41 = vld [vmem:[#allocation5 + $0x250] sm:$0xff] }
  0x37   :  { %261 = vmatprep.subr.mxu0 %v138_v15  ;;  %335 = vmatpush1.msra.mxu1 %v157_v29  ;;  %v83_v42 = vld [vmem:[#allocation5 + $0xd8] sm:$0xff]  ;;  %v122_v43 = vld [vmem:[#allocation5 + $0x210] sm:$0xff]  ;;  %v121_v45 = vld [vmem:[#allocation5 + $0x208] sm:$0xff] }
  0x38   :  { %262 = vmatpush1.msra.mxu0 %v137_v17  ;;  %336 = vmatprep.subr.mxu1 %v149_v31  ;;  %v75_v44 = vld [vmem:[#allocation5 + $0x98] sm:$0xff]  ;;  %v74_v46 = vld [vmem:[#allocation5 + $0x90] sm:$0xff]  ;;  %v113_v47 = vld [vmem:[#allocation5 + $0x1c8] sm:$0xff] }
  0x39   :  { %263 = vmatprep.subr.mxu0 %v129_v20  ;;  %337 = vmatpush1.msra.mxu1 %v148_v33  ;;  %v66_v48 = vld [vmem:[#allocation5 + $0x50] sm:$0xff]  ;;  %v112_v49 = vld [vmem:[#allocation5 + $0x1c0] sm:$0xff]  ;;  %v65_v50 = vld [vmem:[#allocation5 + $0x48] sm:$0xff] }
  0x3a   :  { %264 = vmatpush1.msra.mxu0 %v128_v22  ;;  %338 = vmatprep.subr.mxu1 %v140_v35  ;;  %v104_v51 = vld [vmem:[#allocation5 + $0x180] sm:$0xff]  ;;  %v57_v52 = vld [vmem:[#allocation5 + $0x8] sm:$0xff]  ;;  %v103_v53 = vld [vmem:[#allocation5 + $0x178] sm:$0xff] }
  0x3b   :  { %265 = vmatprep.subr.mxu0 %v120_v24  ;;  %339 = vmatpush1.msra.mxu1 %v139_v37  ;;  %v56_v54 = vld [vmem:[#allocation5] sm:$0xff]  ;;  %v95_v55 = vld [vmem:[#allocation5 + $0x138] sm:$0xff]  ;;  %v860_v56 = vld [vmem:[#allocation2] sm:$0xff] }
  0x3c   :  { %266 = vmatpush1.msra.mxu0 %v119_v26  ;;  %340 = vmatprep.subr.mxu1 %v131_v39  ;;  %v196_v57 = vld [vmem:[#allocation5 + $0x460] sm:$0xff]  ;;  %v195_v58 = vld [vmem:[#allocation5 + $0x458] sm:$0xff]  ;;  %v94_v59 = vld [vmem:[#allocation5 + $0x130] sm:$0xff] }
  0x3d   :  { %267 = vmatprep.subr.mxu0 %v111_v28  ;;  %341 = vmatpush1.msra.mxu1 %v130_v41  ;;  %v187_v60 = vld [vmem:[#allocation5 + $0x418] sm:$0xff]  ;;  %v86_v61 = vld [vmem:[#allocation5 + $0xf0] sm:$0xff]  ;;  %v85_v63 = vld [vmem:[#allocation5 + $0xe8] sm:$0xff] }
  0x3e   :  { %268 = vmatpush1.msra.mxu0 %v110_v30  ;;  %342 = vmatprep.subr.mxu1 %v122_v43  ;;  %v186_v62 = vld [vmem:[#allocation5 + $0x410] sm:$0xff]  ;;  %v77_v2 = vld [vmem:[#allocation5 + $0xa8] sm:$0xff]  ;;  %v76_v4 = vld [vmem:[#allocation5 + $0xa0] sm:$0xff] }
  0x3f   :  { %269 = vmatprep.subr.mxu0 %v102_v32  ;;  %343 = vmatpush1.msra.mxu1 %v121_v45  ;;  %v178_v1 = vld [vmem:[#allocation5 + $0x3d0] sm:$0xff]  ;;  %v177_v3 = vld [vmem:[#allocation5 + $0x3c8] sm:$0xff]  ;;  %v68_v6 = vld [vmem:[#allocation5 + $0x60] sm:$0xff] }
  0x40   :  { %270 = vmatpush1.msra.mxu0 %v101_v34  ;;  %344 = vmatprep.subr.mxu1 %v113_v47  ;;  %v169_v5 = vld [vmem:[#allocation5 + $0x388] sm:$0xff]  ;;  %v168_v7 = vld [vmem:[#allocation5 + $0x380] sm:$0xff]  ;;  %v67_v8 = vld [vmem:[#allocation5 + $0x58] sm:$0xff] }
  0x41   :  { %271 = vmatprep.subr.mxu0 %v93_v36  ;;  %345 = vmatpush1.msra.mxu1 %v112_v49  ;;  %v160_v9 = vld [vmem:[#allocation5 + $0x340] sm:$0xff]  ;;  %v59_v10 = vld [vmem:[#allocation5 + $0x18] sm:$0xff]  ;;  %v58_v12 = vld [vmem:[#allocation5 + $0x10] sm:$0xff] }
  0x42   :  { %272 = vmatpush1.msra.mxu0 %v92_v38  ;;  %346 = vmatprep.subr.mxu1 %v104_v51  ;;  %v159_v11 = vld [vmem:[#allocation5 + $0x338] sm:$0xff]  ;;  %v150_v14 = vld [vmem:[#allocation5 + $0x2f0] sm:$0xff]  ;;  %v141_v18 = vld [vmem:[#allocation5 + $0x2a8] sm:$0xff] }
  0x43   :  { %273 = vmatprep.subr.mxu0 %v84_v40  ;;  %347 = vmatpush1.msra.mxu1 %v103_v53  ;;  %v151_v13 = vld [vmem:[#allocation5 + $0x2f8] sm:$0xff]  ;;  %v198_v15 = vld [vmem:[#allocation5 + $0x470] sm:$0xff]  ;;  %v133_v19 = vld [vmem:[#allocation5 + $0x268] sm:$0xff] }
  0x44   :  { %274 = vmatpush1.msra.mxu0 %v83_v42  ;;  %348 = vmatprep.subr.mxu1 %v95_v55  ;;  %v142_v16 = vld [vmem:[#allocation5 + $0x2b0] sm:$0xff]  ;;  %v863_v17 = vld [vmem:[#allocation2 + $0x8] sm:$0xff]  ;;  %v197_v20 = vld [vmem:[#allocation5 + $0x468] sm:$0xff] }
  0x45   :  { %275 = vmatprep.subr.mxu0 %v75_v44  ;;  %349 = vmatpush1.msra.mxu1 %v94_v59  ;;  %v132_v21 = vld [vmem:[#allocation5 + $0x260] sm:$0xff]  ;;  %v189_v22 = vld [vmem:[#allocation5 + $0x428] sm:$0xff]  ;;  %v123_v25 = vld [vmem:[#allocation5 + $0x218] sm:$0xff] }
  0x46   :  { %276 = vmatpush1.msra.mxu0 %v74_v46  ;;  %350 = vmatprep.subr.mxu1 %v86_v61  ;;  %v124_v23 = vld [vmem:[#allocation5 + $0x220] sm:$0xff]  ;;  %v115_v27 = vld [vmem:[#allocation5 + $0x1d8] sm:$0xff]  ;;  %v114_v28 = vld [vmem:[#allocation5 + $0x1d0] sm:$0xff] }
  0x47   :  { %277 = vmatprep.subr.mxu0 %v66_v48  ;;  %351 = vmatpush1.msra.mxu1 %v85_v63  ;;  %v188_v24 = vld [vmem:[#allocation5 + $0x420] sm:$0xff]  ;;  %v179_v29 = vld [vmem:[#allocation5 + $0x3d8] sm:$0xff]  ;;  %v106_v30 = vld [vmem:[#allocation5 + $0x190] sm:$0xff] }
  0x48   :  { %278 = vmatpush1.msra.mxu0 %v65_v50  ;;  %352 = vmatprep.subr.mxu1 %v77_v2  ;;  %v180_v26 = vld [vmem:[#allocation5 + $0x3e0] sm:$0xff]  ;;  %v171_v31 = vld [vmem:[#allocation5 + $0x398] sm:$0xff]  ;;  %v105_v32 = vld [vmem:[#allocation5 + $0x188] sm:$0xff] }
  0x49   :  { %279 = vmatprep.subr.mxu0 %v57_v52  ;;  %353 = vmatpush1.msra.mxu1 %v76_v4  ;;  %v170_v33 = vld [vmem:[#allocation5 + $0x390] sm:$0xff]  ;;  %v97_v34 = vld [vmem:[#allocation5 + $0x148] sm:$0xff]  ;;  %v96_v36 = vld [vmem:[#allocation5 + $0x140] sm:$0xff] }
  0x4a   :  { %280 = vmatpush1.msra.mxu0 %v56_v54  ;;  %354 = vmatprep.subr.mxu1 %v68_v6  ;;  %v162_v35 = vld [vmem:[#allocation5 + $0x350] sm:$0xff]  ;;  %v161_v37 = vld [vmem:[#allocation5 + $0x348] sm:$0xff]  ;;  %v88_v38 = vld [vmem:[#allocation5 + $0x100] sm:$0xff] }
  0x4b   :  { %314 = vmatmul.mubr.f32.vlgmr.msra.gmra.mxu0 %v860_v56  ;;  %403 = vmatprep.subr.mxu0 %v196_v57  ;;  %v153_v39 = vld [vmem:[#allocation5 + $0x308] sm:$0xff]  ;;  %v87_v40 = vld [vmem:[#allocation5 + $0xf8] sm:$0xff]  ;;  %v152_v41 = vld [vmem:[#allocation5 + $0x300] sm:$0xff] }
  0x4c   :  { %404 = vmatpush1.msra.mxu0 %v195_v58  ;;  %355 = vmatpush1.msra.mxu1 %v67_v8  ;;  %v79_v42 = vld [vmem:[#allocation5 + $0xb8] sm:$0xff]  ;;  %v144_v43 = vld [vmem:[#allocation5 + $0x2c0] sm:$0xff]  ;;  %v78_v44 = vld [vmem:[#allocation5 + $0xb0] sm:$0xff] }
  0x4d   :  { %405 = vmatprep.subr.mxu0 %v187_v60  ;;  %356 = vmatprep.subr.mxu1 %v59_v10  ;;  %v143_v45 = vld [vmem:[#allocation5 + $0x2b8] sm:$0xff]  ;;  %v70_v46 = vld [vmem:[#allocation5 + $0x70] sm:$0xff]  ;;  %v69_v48 = vld [vmem:[#allocation5 + $0x68] sm:$0xff] }
  0x4e   :  { %406 = vmatpush1.msra.mxu0 %v186_v62  ;;  %357 = vmatpush1.msra.mxu1 %v58_v12  ;;  %v135_v47 = vld [vmem:[#allocation5 + $0x278] sm:$0xff]  ;;  %v134_v49 = vld [vmem:[#allocation5 + $0x270] sm:$0xff]  ;;  %v61_v50 = vld [vmem:[#allocation5 + $0x28] sm:$0xff] }
  0x4f   :  { %407 = vmatprep.subr.mxu0 %v178_v1  ;;  %319 = vmatprep.mubr.f32.mxu0 %v824_v0  ;;  %v126_v51 = vld [vmem:[#allocation5 + $0x230] sm:$0xff]  ;;  %v60_v52 = vld [vmem:[#allocation5 + $0x20] sm:$0xff]  ;;  %v125_v53 = vld [vmem:[#allocation5 + $0x228] sm:$0xff] }
  0x50   :  { %408 = vmatpush1.msra.mxu0 %v177_v3  ;;  %480 = vmatprep.subr.mxu1 %v198_v15  ;;  %v199_v54 = vld [vmem:[#allocation5 + $0x478] sm:$0xff]  ;;  %v117_v55 = vld [vmem:[#allocation5 + $0x1e8] sm:$0xff]  ;;  %v190_v57 = vld [vmem:[#allocation5 + $0x430] sm:$0xff] }
  0x51   :  { %409 = vmatprep.subr.mxu0 %v169_v5  ;;  %320 = vmatmul.mubr.f32.gmra.mxu0 %v863_v17  ;;  %v116_v58 = vld [vmem:[#allocation5 + $0x1e0] sm:$0xff]  ;;  %v181_v60 = vld [vmem:[#allocation5 + $0x3e8] sm:$0xff]  ;;  %v107_v61 = vld [vmem:[#allocation5 + $0x198] sm:$0xff] }
  0x52   :  { %410 = vmatpush1.msra.mxu0 %v168_v7  ;;  %391 = vmatmul.mubr.f32.vlgmr.msra.gmra.mxu1 %v860_v56  ;;  %v108_v59 = vld [vmem:[#allocation5 + $0x1a0] sm:$0xff]  ;;  %v99_v62 = vld [vmem:[#allocation5 + $0x158] sm:$0xff]  ;;  %v98_v1 = vld [vmem:[#allocation5 + $0x150] sm:$0xff] }
  0x53   :  { %411 = vmatprep.subr.mxu0 %v160_v9  ;;  %481 = vmatpush1.msra.mxu1 %v197_v20  ;;  %v172_v63 = vld [vmem:[#allocation5 + $0x3a0] sm:$0xff]  ;;  %v90_v2 = vld [vmem:[#allocation5 + $0x110] sm:$0xff]  ;;  %v163_v3 = vld [vmem:[#allocation5 + $0x358] sm:$0xff] }
  0x54   :  { %412 = vmatpush1.msra.mxu0 %v159_v11  ;;  %482 = vmatprep.subr.mxu1 %v189_v22  ;;  %v89_v4 = vld [vmem:[#allocation5 + $0x108] sm:$0xff]  ;;  %v154_v6 = vld [vmem:[#allocation5 + $0x310] sm:$0xff]  ;;  %v80_v7 = vld [vmem:[#allocation5 + $0xc0] sm:$0xff] }
  0x55   :  { %413 = vmatprep.subr.mxu0 %v151_v13  ;;  %483 = vmatpush1.msra.mxu1 %v188_v24  ;;  %v81_v5 = vld [vmem:[#allocation5 + $0xc8] sm:$0xff]  ;;  %v72_v9 = vld [vmem:[#allocation5 + $0x80] sm:$0xff]  ;;  %v71_v11 = vld [vmem:[#allocation5 + $0x78] sm:$0xff] }
  0x56   :  { %414 = vmatpush1.msra.mxu0 %v150_v14  ;;  %484 = vmatprep.subr.mxu1 %v180_v26  ;;  %v145_v8 = vld [vmem:[#allocation5 + $0x2c8] sm:$0xff]  ;;  %v136_v10 = vld [vmem:[#allocation5 + $0x280] sm:$0xff]  ;;  %v63_v12 = vld [vmem:[#allocation5 + $0x38] sm:$0xff] }
  0x57   :  { %415 = vmatprep.subr.mxu0 %v142_v16  ;;  %467 = vmatprep.mubr.f32.mxu0 %v824_v0  ;;  %v127_v13 = vld [vmem:[#allocation5 + $0x238] sm:$0xff]  ;;  %v62_v14 = vld [vmem:[#allocation5 + $0x30] sm:$0xff]  ;;  %v109_v16 = vld [vmem:[#allocation5 + $0x1a8] sm:$0xff] }
  0x58   :  { %416 = vmatpush1.msra.mxu0 %v141_v18  ;;  %485 = vmatpush1.msra.mxu1 %v179_v29  ;;  %v118_v15 = vld [vmem:[#allocation5 + $0x1f0] sm:$0xff]  ;;  %v100_v18 = vld [vmem:[#allocation5 + $0x160] sm:$0xff] }
  0x59   :  { %417 = vmatprep.subr.mxu0 %v133_v19  ;;  %486 = vmatprep.subr.mxu1 %v171_v31  ;;  %v91_v19 = vld [vmem:[#allocation5 + $0x118] sm:$0xff]  ;;  %v82_v20 = vld [vmem:[#allocation5 + $0xd0] sm:$0xff]  ;;  %v64_v22 = vld [vmem:[#allocation5 + $0x40] sm:$0xff] }
  0x5a   :  { %418 = vmatpush1.msra.mxu0 %v132_v21  ;;  %487 = vmatpush1.msra.mxu1 %v170_v33  ;;  %v73_v21 = vld [vmem:[#allocation5 + $0x88] sm:$0xff] }
  0x5b   :  { %419 = vmatprep.subr.mxu0 %v124_v23  ;;  %488 = vmatprep.subr.mxu1 %v162_v35 }
  0x5c   :  { %420 = vmatpush1.msra.mxu0 %v123_v25  ;;  %489 = vmatpush1.msra.mxu1 %v161_v37 }
  0x5d   :  { %421 = vmatprep.subr.mxu0 %v115_v27  ;;  %490 = vmatprep.subr.mxu1 %v153_v39 }
  0x5e   :  { %422 = vmatpush1.msra.mxu0 %v114_v28  ;;  %491 = vmatpush1.msra.mxu1 %v152_v41 }
  0x5f   :  { %423 = vmatprep.subr.mxu0 %v106_v30  ;;  %492 = vmatprep.subr.mxu1 %v144_v43 }
  0x60   :  { %424 = vmatpush1.msra.mxu0 %v105_v32  ;;  %493 = vmatpush1.msra.mxu1 %v143_v45 }
  0x61   :  { %425 = vmatprep.subr.mxu0 %v97_v34  ;;  %494 = vmatprep.subr.mxu1 %v135_v47 }
  0x62   :  { %426 = vmatpush1.msra.mxu0 %v96_v36  ;;  %495 = vmatpush1.msra.mxu1 %v134_v49 }
  0x63   :  { %427 = vmatprep.subr.mxu0 %v88_v38  ;;  %496 = vmatprep.subr.mxu1 %v126_v51 }
  0x64   :  { %428 = vmatpush1.msra.mxu0 %v87_v40  ;;  %497 = vmatpush1.msra.mxu1 %v125_v53 }
  0x65   :  { %429 = vmatprep.subr.mxu0 %v79_v42  ;;  %498 = vmatprep.subr.mxu1 %v117_v55 }
  0x66   :  { %430 = vmatpush1.msra.mxu0 %v78_v44  ;;  %499 = vmatpush1.msra.mxu1 %v116_v58 }
  0x67   :  { %431 = vmatprep.subr.mxu0 %v70_v46  ;;  %500 = vmatprep.subr.mxu1 %v108_v59 }
  0x68   :  { %432 = vmatpush1.msra.mxu0 %v69_v48  ;;  %501 = vmatpush1.msra.mxu1 %v107_v61 }
  0x69   :  { %433 = vmatprep.subr.mxu0 %v61_v50  ;;  %502 = vmatprep.subr.mxu1 %v99_v62 }
  0x6a   :  { %434 = vmatpush1.msra.mxu0 %v60_v52  ;;  %503 = vmatpush1.msra.mxu1 %v98_v1 }
  0x6b   :  { %468 = vmatmul.mubr.f32.vlgmr.msra.gmra.mxu0 %v860_v56  ;;  %687 = vmatprep.subr.mxu0 %v199_v54 }
  0x6c   :  { %688 = vmatpush3.msra.mxu0 %v199_v54  ;;  %504 = vmatprep.subr.mxu1 %v90_v2 }
  0x6d   :  { %689 = vmatprep.subr.mxu0 %v190_v57  ;;  %505 = vmatpush1.msra.mxu1 %v89_v4 }
  0x6e   :  { %690 = vmatpush3.msra.mxu0 %v190_v57  ;;  %506 = vmatprep.subr.mxu1 %v81_v5 }
  0x6f   :  { %691 = vmatprep.subr.mxu0 %v181_v60  ;;  %396 = vmatprep.mubr.f32.mxu1 %v824_v0 }
  0x70   :  { %692 = vmatpush3.msra.mxu0 %v181_v60  ;;  %507 = vmatpush1.msra.mxu1 %v80_v7 }
  0x71   :  { %693 = vmatprep.subr.mxu0 %v172_v63  ;;  %397 = vmatmul.mubr.f32.gmra.mxu1 %v863_v17 }
  0x72   :  { %694 = vmatpush3.msra.mxu0 %v172_v63  ;;  %508 = vmatprep.subr.mxu1 %v72_v9  ;;  %v668_v9 = vld [vmem:[#allocation7 + $0x8] ss:$0 sm:$0xff] }
  0x73   :  { %695 = vmatprep.subr.mxu0 %v163_v3  ;;  %509 = vmatpush1.msra.mxu1 %v71_v11 }
  0x74   :  { %696 = vmatpush3.msra.mxu0 %v163_v3  ;;  %510 = vmatprep.subr.mxu1 %v63_v12 }
  0x75   :  { %697 = vmatprep.subr.mxu0 %v154_v6  ;;  %473 = vmatprep.mubr.f32.mxu0 %v824_v0 }
  0x76   :  { %698 = vmatpush3.msra.mxu0 %v154_v6  ;;  %511 = vmatpush1.msra.mxu1 %v62_v14 }
  0x77   :  { %699 = vmatprep.subr.mxu0 %v145_v8  ;;  %544 = vmatprep.mubr.f32.mxu1 %v824_v0 }
  0x78   :  { %700 = vmatpush3.msra.mxu0 %v145_v8  ;;  %545 = vmatmul.mubr.f32.vlgmr.msra.gmra.mxu1 %v860_v56 }
  0x79   :  { %701 = vmatprep.subr.mxu0 %v136_v10  ;;  %474 = vmatmul.mubr.f32.gmra.mxu0 %v863_v17 }
  0x7a   :  { %702 = vmatpush3.msra.mxu0 %v136_v10  ;;  %550 = vmatprep.mubr.f32.mxu1 %v824_v0  ;;  %v204_v0 = vlaneseq }
  0x7b   :  { %703 = vmatprep.subr.mxu0 %v127_v13  ;;  %719 = vmatprep.mubr.f32.mxu0 %v860_v56  ;;  %v200_v56 = vld [vmem:[#allocation7] sm:$0xff] }
  0x7c   :  { %704 = vmatpush3.msra.mxu0 %v127_v13  ;;  %551 = vmatmul.mubr.f32.gmra.mxu1 %v863_v17  ;;  %v205_v23 = vshrl.u32 %v204_v0, 7 }
  0x7d   :  { %705 = vmatprep.subr.mxu0 %v118_v15 }
  0x7e   :  { %706 = vmatpush3.msra.mxu0 %v118_v15  ;;  %v206_v24 = vsub.s32 0, %v205_v23  ;;  %v210_v25 = vsub.s32 1, %v205_v23  ;;  %v214_v32 = vsub.s32 2, %v205_v23  ;;  %v218_v33 = vsub.s32 3, %v205_v23 }
  0x7f   :  { %707 = vmatprep.subr.mxu0 %v109_v16  ;;  %v222_v43 = vsub.s32 4, %v205_v23  ;;  %v226_v44 = vsub.s32 5, %v205_v23  ;;  %v230_v52 = vsub.s32 6, %v205_v23  ;;  %v234_v55 = vsub.s32 7, %v205_v23 }
  0x80   :  { %708 = vmatpush3.msra.mxu0 %v109_v16  ;;  %v207_v26 = vrot.slane %v200_v56, %v206_v24  ;;  %v211_v27 = vrot.slane %v200_v56, %v210_v25  ;;  %v215_v34 = vrot.slane %v200_v56, %v214_v32  ;;  %v219_v36 = vrot.slane %v200_v56, %v218_v33 }
  0x81   :  { %709 = vmatprep.subr.mxu0 %v100_v18  ;;  %v223_v45 = vrot.slane %v200_v56, %v222_v43  ;;  %v227_v46 = vrot.slane %v200_v56, %v226_v44  ;;  %v231_v58 = vrot.slane %v200_v56, %v230_v52  ;;  %v235_v59 = vrot.slane %v200_v56, %v234_v55 }
  0x82   :  { %710 = vmatpush3.msra.mxu0 %v100_v18 }
  0x83   :  { %711 = vmatprep.subr.mxu0 %v91_v19 }
  0x84   :  { %712 = vmatpush3.msra.mxu0 %v91_v19 }
  0x85   :  { %713 = vmatprep.subr.mxu0 %v82_v20 }
  0x86   :  { %714 = vmatpush3.msra.mxu0 %v82_v20 }
  0x87   :  { %715 = vmatprep.subr.mxu0 %v73_v21 }
  0x88   :  { %716 = vmatpush3.msra.mxu0 %v73_v21 }
  0x89   :  { %717 = vmatprep.subr.mxu0 %v64_v22 }
  0x8a   :  { %718 = vmatpush3.msra.mxu0 %v64_v22 }
  0x8b   :  { %720 = vmatmul.mubr.f32.vlgmr.msra.gmra.mxu0 %v863_v17 }
 0x10b   :  { %v315_v28 = vpop.f32.mrf.mxu0 }
 0x10c   :  { %v316_v29 = vadd.f32 %v315_v28, %v207_v26 }
 0x10d   :  { %v317_v30 = vpop.f32.mrf.mxu0 }
 0x10e   :  { %632 = vst [vmem:[#allocation8] sm:$0xff] %v316_v29  ;;  %v318_v31 = vadd.f32 %v317_v30, %v211_v27 }
 0x110   :  { %633 = vst [vmem:[#allocation8 + $0x8] sm:$0xff] %v318_v31 }
 0x111   :  { %v321_v35 = vpop.f32.mrf.mxu0 }
 0x112   :  { %v322_v37 = vadd.f32 %v321_v35, %v207_v26  ;;  %v392_v17 = vpop.f32.mrf.mxu1 }
 0x113   :  { %v393_v38 = vadd.f32 %v392_v17, %v215_v34  ;;  %v323_v39 = vpop.f32.mrf.mxu0 }
 0x114   :  { %641 = vst [vmem:[#allocation8 + $0x48] sm:$0xff] %v322_v37  ;;  %v324_v40 = vadd.f32 %v323_v39, %v211_v27  ;;  %v394_v41 = vpop.f32.mrf.mxu1 }
 0x115   :  { %634 = vst [vmem:[#allocation8 + $0x10] sm:$0xff] %v393_v38  ;;  %v395_v42 = vadd.f32 %v394_v41, %v219_v36 }
 0x116   :  { %642 = vst [vmem:[#allocation8 + $0x50] sm:$0xff] %v324_v40 }
 0x117   :  { %635 = vst [vmem:[#allocation8 + $0x18] sm:$0xff] %v395_v42 }
 0x12b   :  { %v469_v47 = vpop.f32.mrf.mxu0 }
 0x12c   :  { %v470_v48 = vadd.f32 %v469_v47, %v223_v45 }
 0x12d   :  { %v471_v49 = vpop.f32.mrf.mxu0 }
 0x12e   :  { %636 = vst [vmem:[#allocation8 + $0x20] sm:$0xff] %v470_v48  ;;  %v472_v50 = vadd.f32 %v471_v49, %v227_v46 }
 0x130   :  { %637 = vst [vmem:[#allocation8 + $0x28] sm:$0xff] %v472_v50 }
 0x131   :  { %v398_v51 = vpop.f32.mrf.mxu1 }
 0x132   :  { %v399_v53 = vadd.f32 %v398_v51, %v215_v34 }
 0x133   :  { %v400_v54 = vpop.f32.mrf.mxu1 }
 0x134   :  { %643 = vst [vmem:[#allocation8 + $0x58] sm:$0xff] %v399_v53  ;;  %v401_v57 = vadd.f32 %v400_v54, %v219_v36 }
 0x136   :  { %644 = vst [vmem:[#allocation8 + $0x60] sm:$0xff] %v401_v57 }
 0x138   :  { %v546_v60 = vpop.f32.mrf.mxu1 }
 0x139   :  { %v475_v61 = vpop.f32.mrf.mxu0  ;;  %v547_v62 = vadd.f32 %v546_v60, %v231_v58 }
 0x13a   :  { %v476_v63 = vadd.f32 %v475_v61, %v223_v45  ;;  %v548_v1 = vpop.f32.mrf.mxu1 }
 0x13b   :  { %638 = vst [vmem:[#allocation8 + $0x30] sm:$0xff] %v547_v62  ;;  %v477_v2 = vpop.f32.mrf.mxu0  ;;  %v549_v3 = vadd.f32 %v548_v1, %v235_v59 }
 0x13c   :  { %645 = vst [vmem:[#allocation8 + $0x68] sm:$0xff] %v476_v63  ;;  %v478_v4 = vadd.f32 %v477_v2, %v227_v46  ;;  %v552_v5 = vpop.f32.mrf.mxu1 }
 0x13d   :  { %639 = vst [vmem:[#allocation8 + $0x38] sm:$0xff] %v549_v3  ;;  %v553_v6 = vadd.f32 %v552_v5, %v231_v58 }
 0x13e   :  { %646 = vst [vmem:[#allocation8 + $0x70] sm:$0xff] %v478_v4  ;;  %v554_v7 = vpop.f32.mrf.mxu1 }
 0x13f   :  { %647 = vst [vmem:[#allocation8 + $0x78] sm:$0xff] %v553_v6  ;;  %v555_v8 = vadd.f32 %v554_v7, %v235_v59 }
 0x141   :  { %648 = vst [vmem:[#allocation8 + $0x80] sm:$0xff] %v555_v8 }
 0x14b   :  { %v721_v10 = vpop.f32.mrf.mxu0 }
 0x14c   :  { %v629_v11 = vadd.f32 %v721_v10, %v668_v9 }
 0x14d   :  { %v623_v12 = vpop.f32.mrf.mxu0 }
 0x14e   :  { %649 = vst [vmem:[#allocation8 + $0x88] sm:$0xff] %v629_v11  ;;  %v624_v13 = vadd.f32 %v668_v9, %v623_v12 }
 0x150   :  { %640 = vst [vmem:[#allocation8 + $0x40] sm:$0xff] %v624_v13 }
 0x151   :  { %802 = shalt.err (!%p799_p5)
}
 0x152   :  { %661 = dma.vmem_to_hbm [thread:$0]  %s656_s2, 2304, %s889_s3, [#allocation4], %s818_s15, %s818_s15, %s819_s16  }
 0x153   :  { %815 = dma.done.wait [#allocation4], 2304  }
 0x154   :  { %816 = vsyncadd [#allocation4], 4294964992 }
 0x155   :  { %665 = vsyncpa [#allocation3], 1 }
 0x156   :  { %666 = vsyncpa [#allocation6], 1 }
 0x157   :  { %667 = vsyncpa [#allocation4], 1 }

// kernel: tpu_custom_call.1
= control target key start
LH: loop header
LB: loop body
LE: loop exit
PB: predicated region body
PF: predicated region fallthrough
CT: control target
= control target key end

     0   :  { %8 = vsyncpa [#allocation3], 0  ;;  %s886_s0 = inlined_call_operand.hbm [shape: f32[16,128], index: 0, kind: input, shape index: {}]   ;;  %s887_s1 = inlined_call_operand.hbm [shape: f32[128,1152], index: 1, kind: input, shape index: {}]   ;;  %s888_s2 = inlined_call_operand.hbm [shape: f32[1,1152], index: 2, kind: input, shape index: {}]   ;;  %s889_s3 = inlined_call_operand.hbm [shape: f32[16,1152], index: 3, kind: output, shape index: {}]  }
   0x1   :  { %9 = vsyncpa [#allocation6], 0 }
   0x2   :  { %10 = vsyncpa [#allocation4], 0  ;;  %s817_s12 = smov [#allocation5]  }
   0x3   :  { %s28_s13 = sshll.u32 %s817_s12, 4  ;;  %s29_s13 = int_to_ptr.vmem [resolvable:$true] %s28_s13 }
   0x4   :  { %s739_s14 = scalar_lea.vmem %s29_s13, 18432  ;;  %p744_p1 = scmp.lt.s32.totalorder %s29_s13, %s29_s13 }
   0x5   :  { %p740_p0 = scmp.ne.s32.totalorder %s29_s13, %s739_s14  ;;  %p745_p2 = scmp.lt.s32.totalorder %s739_s14, %s739_s14 }
   0x7   :  { %p746_p3 = por %p745_p2, %p744_p1 }
   0x9   :  { %p747_p4 = pnand %p746_p3, %p740_p0 }
   0xb   :  { %750 = shalt.err (!%p747_p4)
}
   0xc   :  { %s818_s15 = smov 1152   ;;  %s819_s16 = smov 72  }
   0xd   :  { %34 = dma.hbm_to_vmem [thread:$0]  %s887_s1, 18432, %s29_s13, [#allocation6], %s818_s15, %s818_s15, %s819_s16  }
   0xe   :  { %s820_s19 = smov [#allocation2]  }
   0xf   :  { %s16_s20 = sshll.u32 %s820_s19, 4  ;;  %s17_s20 = int_to_ptr.vmem [resolvable:$true] %s16_s20 }
  0x10   :  { %s759_s21 = scalar_lea.vmem %s17_s20, 256  ;;  %p764_p6 = scmp.lt.s32.totalorder %s17_s20, %s17_s20 }
  0x11   :  { %p760_p5 = scmp.ne.s32.totalorder %s17_s20, %s759_s21  ;;  %p765_p7 = scmp.lt.s32.totalorder %s759_s21, %s759_s21 }
  0x13   :  { %p766_p8 = por %p765_p7, %p764_p6 }
  0x15   :  { %p767_p9 = pnand %p766_p8, %p760_p5 }
  0x17   :  { %770 = shalt.err (!%p767_p9)
}
  0x18   :  { %s821_s22 = smov 128   ;;  %s822_s23 = smov 8  }
  0x19   :  { %22 = dma.hbm_to_vmem [thread:$0]  %s886_s0, 256, %s17_s20, [#allocation3], %s821_s22, %s821_s22, %s822_s23  }
  0x1a   :  { %s823_s26 = smov [#allocation7]  }
  0x1b   :  { %s41_s27 = sshll.u32 %s823_s26, 4  ;;  %s42_s27 = int_to_ptr.vmem [resolvable:$true] %s41_s27 }
  0x1c   :  { %s779_s1 = scalar_lea.vmem %s42_s27, 144  ;;  %s783_s28 = scalar_lea.vmem %s42_s27, 160 }
  0x1d   :  { %p780_p10 = scmp.ne.s32.totalorder %s42_s27, %s779_s1  ;;  %p784_p11 = scmp.lt.s32.totalorder %s42_s27, %s42_s27 }
  0x1e   :  { %p785_p12 = scmp.lt.s32.totalorder %s783_s28, %s779_s1 }
  0x20   :  { %p786_p13 = por %p785_p12, %p784_p11 }
  0x22   :  { %p787_p0 = pnand %p786_p13, %p780_p10 }
  0x24   :  { %790 = shalt.err (!%p787_p0)
}
  0x25   :  { %44 = dma.hbm_to_vmem [thread:$0]  %s888_s2, 144, %s42_s27, [#allocation6]  }
  0x26   :  { %811 = dma.done.wait [#allocation3], 256  }
  0x27   :  { %812 = vsyncadd [#allocation3], 4294967040 }
  0x28   :  { %813 = dma.done.wait [#allocation6], 18576  }
  0x29   :  { %814 = vsyncadd [#allocation6], 4294948720  ;;  %v824_v0 = vmov 0.0   ;;  %v192_v1 = vld [vmem:[#allocation5 + $0x440] sm:$0xff]  ;;  %v191_v2 = vld [vmem:[#allocation5 + $0x438] sm:$0xff]  ;;  %s825_s0 = smov [#allocation8]  }
  0x2a   :  { %313 = vmatprep.mubr.f32.mxu0 %v824_v0  ;;  %390 = vmatprep.mubr.f32.mxu1 %v824_v0  ;;  %v183_v3 = vld [vmem:[#allocation5 + $0x3f8] sm:$0xff]  ;;  %v182_v4 = vld [vmem:[#allocation5 + $0x3f0] sm:$0xff]  ;;  %v173_v6 = vld [vmem:[#allocation5 + $0x3a8] sm:$0xff]  ;;  %s655_s2 = sshll.u32 %s825_s0, 4  ;;  %s656_s2 = int_to_ptr.vmem [resolvable:$true] %s655_s2 }
  0x2b   :  { %249 = vmatprep.subr.mxu0 %v192_v1  ;;  %v174_v5 = vld [vmem:[#allocation5 + $0x3b0] sm:$0xff]  ;;  %v165_v7 = vld [vmem:[#allocation5 + $0x368] sm:$0xff]  ;;  %v164_v8 = vld [vmem:[#allocation5 + $0x360] sm:$0xff]  ;;  %s791_s4 = scalar_lea.vmem %s656_s2, 2304  ;;  %p796_p2 = scmp.lt.s32.totalorder %s656_s2, %s656_s2 }
  0x2c   :  { %250 = vmatpush1.msra.mxu0 %v191_v2  ;;  %v156_v9 = vld [vmem:[#allocation5 + $0x320] sm:$0xff]  ;;  %v155_v10 = vld [vmem:[#allocation5 + $0x318] sm:$0xff]  ;;  %v146_v12 = vld [vmem:[#allocation5 + $0x2d0] sm:$0xff]  ;;  %p792_p1 = scmp.ne.s32.totalorder %s656_s2, %s791_s4  ;;  %p797_p3 = scmp.lt.s32.totalorder %s791_s4, %s791_s4 }
  0x2d   :  { %251 = vmatprep.subr.mxu0 %v183_v3  ;;  %v147_v11 = vld [vmem:[#allocation5 + $0x2d8] sm:$0xff]  ;;  %v194_v13 = vld [vmem:[#allocation5 + $0x450] sm:$0xff]  ;;  %v193_v14 = vld [vmem:[#allocation5 + $0x448] sm:$0xff] }
  0x2e   :  { %252 = vmatpush1.msra.mxu0 %v182_v4  ;;  %v138_v15 = vld [vmem:[#allocation5 + $0x290] sm:$0xff]  ;;  %326 = vmatprep.subr.mxu1 %v194_v13  ;;  %v185_v16 = vld [vmem:[#allocation5 + $0x408] sm:$0xff]  ;;  %v184_v18 = vld [vmem:[#allocation5 + $0x400] sm:$0xff]  ;;  %p798_p4 = por %p797_p3, %p796_p2 }
  0x2f   :  { %253 = vmatprep.subr.mxu0 %v174_v5  ;;  %v137_v17 = vld [vmem:[#allocation5 + $0x288] sm:$0xff]  ;;  %327 = vmatpush1.msra.mxu1 %v193_v14  ;;  %v176_v19 = vld [vmem:[#allocation5 + $0x3c0] sm:$0xff]  ;;  %v175_v21 = vld [vmem:[#allocation5 + $0x3b8] sm:$0xff] }
  0x30   :  { %254 = vmatpush1.msra.mxu0 %v173_v6  ;;  %v129_v20 = vld [vmem:[#allocation5 + $0x248] sm:$0xff]  ;;  %328 = vmatprep.subr.mxu1 %v185_v16  ;;  %v128_v22 = vld [vmem:[#allocation5 + $0x240] sm:$0xff]  ;;  %v167_v23 = vld [vmem:[#allocation5 + $0x378] sm:$0xff]  ;;  %p799_p5 = pnand %p798_p4, %p792_p1 }
  0x31   :  { %255 = vmatprep.subr.mxu0 %v165_v7  ;;  %329 = vmatpush1.msra.mxu1 %v184_v18  ;;  %v120_v24 = vld [vmem:[#allocation5 + $0x200] sm:$0xff]  ;;  %v166_v25 = vld [vmem:[#allocation5 + $0x370] sm:$0xff]  ;;  %v119_v26 = vld [vmem:[#allocation5 + $0x1f8] sm:$0xff] }
  0x32   :  { %256 = vmatpush1.msra.mxu0 %v164_v8  ;;  %330 = vmatprep.subr.mxu1 %v176_v19  ;;  %v158_v27 = vld [vmem:[#allocation5 + $0x330] sm:$0xff]  ;;  %v111_v28 = vld [vmem:[#allocation5 + $0x1b8] sm:$0xff]  ;;  %v157_v29 = vld [vmem:[#allocation5 + $0x328] sm:$0xff] }
  0x33   :  { %257 = vmatprep.subr.mxu0 %v156_v9  ;;  %331 = vmatpush1.msra.mxu1 %v175_v21  ;;  %v110_v30 = vld [vmem:[#allocation5 + $0x1b0] sm:$0xff]  ;;  %v149_v31 = vld [vmem:[#allocation5 + $0x2e8] sm:$0xff]  ;;  %v148_v33 = vld [vmem:[#allocation5 + $0x2e0] sm:$0xff] }
  0x34   :  { %258 = vmatpush1.msra.mxu0 %v155_v10  ;;  %332 = vmatprep.subr.mxu1 %v167_v23  ;;  %v102_v32 = vld [vmem:[#allocation5 + $0x170] sm:$0xff]  ;;  %v101_v34 = vld [vmem:[#allocation5 + $0x168] sm:$0xff]  ;;  %v140_v35 = vld [vmem:[#allocation5 + $0x2a0] sm:$0xff] }
  0x35   :  { %259 = vmatprep.subr.mxu0 %v147_v11  ;;  %333 = vmatpush1.msra.mxu1 %v166_v25  ;;  %v93_v36 = vld [vmem:[#allocation5 + $0x128] sm:$0xff]  ;;  %v139_v37 = vld [vmem:[#allocation5 + $0x298] sm:$0xff]  ;;  %v92_v38 = vld [vmem:[#allocation5 + $0x120] sm:$0xff] }
  0x36   :  { %260 = vmatpush1.msra.mxu0 %v146_v12  ;;  %334 = vmatprep.subr.mxu1 %v158_v27  ;;  %v131_v39 = vld [vmem:[#allocation5 + $0x258] sm:$0xff]  ;;  %v84_v40 = vld [vmem:[#allocation5 + $0xe0] sm:$0xff]  ;;  %v130_v41 = vld [vmem:[#allocation5 + $0x250] sm:$0xff] }
  0x37   :  { %261 = vmatprep.subr.mxu0 %v138_v15  ;;  %335 = vmatpush1.msra.mxu1 %v157_v29  ;;  %v83_v42 = vld [vmem:[#allocation5 + $0xd8] sm:$0xff]  ;;  %v122_v43 = vld [vmem:[#allocation5 + $0x210] sm:$0xff]  ;;  %v121_v45 = vld [vmem:[#allocation5 + $0x208] sm:$0xff] }
  0x38   :  { %262 = vmatpush1.msra.mxu0 %v137_v17  ;;  %336 = vmatprep.subr.mxu1 %v149_v31  ;;  %v75_v44 = vld [vmem:[#allocation5 + $0x98] sm:$0xff]  ;;  %v74_v46 = vld [vmem:[#allocation5 + $0x90] sm:$0xff]  ;;  %v113_v47 = vld [vmem:[#allocation5 + $0x1c8] sm:$0xff] }
  0x39   :  { %263 = vmatprep.subr.mxu0 %v129_v20  ;;  %337 = vmatpush1.msra.mxu1 %v148_v33  ;;  %v66_v48 = vld [vmem:[#allocation5 + $0x50] sm:$0xff]  ;;  %v112_v49 = vld [vmem:[#allocation5 + $0x1c0] sm:$0xff]  ;;  %v65_v50 = vld [vmem:[#allocation5 + $0x48] sm:$0xff] }
  0x3a   :  { %264 = vmatpush1.msra.mxu0 %v128_v22  ;;  %338 = vmatprep.subr.mxu1 %v140_v35  ;;  %v104_v51 = vld [vmem:[#allocation5 + $0x180] sm:$0xff]  ;;  %v57_v52 = vld [vmem:[#allocation5 + $0x8] sm:$0xff]  ;;  %v103_v53 = vld [vmem:[#allocation5 + $0x178] sm:$0xff] }
  0x3b   :  { %265 = vmatprep.subr.mxu0 %v120_v24  ;;  %339 = vmatpush1.msra.mxu1 %v139_v37  ;;  %v56_v54 = vld [vmem:[#allocation5] sm:$0xff]  ;;  %v95_v55 = vld [vmem:[#allocation5 + $0x138] sm:$0xff]  ;;  %v860_v56 = vld [vmem:[#allocation2] sm:$0xff] }
  0x3c   :  { %266 = vmatpush1.msra.mxu0 %v119_v26  ;;  %340 = vmatprep.subr.mxu1 %v131_v39  ;;  %v196_v57 = vld [vmem:[#allocation5 + $0x460] sm:$0xff]  ;;  %v195_v58 = vld [vmem:[#allocation5 + $0x458] sm:$0xff]  ;;  %v94_v59 = vld [vmem:[#allocation5 + $0x130] sm:$0xff] }
  0x3d   :  { %267 = vmatprep.subr.mxu0 %v111_v28  ;;  %341 = vmatpush1.msra.mxu1 %v130_v41  ;;  %v187_v60 = vld [vmem:[#allocation5 + $0x418] sm:$0xff]  ;;  %v86_v61 = vld [vmem:[#allocation5 + $0xf0] sm:$0xff]  ;;  %v85_v63 = vld [vmem:[#allocation5 + $0xe8] sm:$0xff] }
  0x3e   :  { %268 = vmatpush1.msra.mxu0 %v110_v30  ;;  %342 = vmatprep.subr.mxu1 %v122_v43  ;;  %v186_v62 = vld [vmem:[#allocation5 + $0x410] sm:$0xff]  ;;  %v77_v2 = vld [vmem:[#allocation5 + $0xa8] sm:$0xff]  ;;  %v76_v4 = vld [vmem:[#allocation5 + $0xa0] sm:$0xff] }
  0x3f   :  { %269 = vmatprep.subr.mxu0 %v102_v32  ;;  %343 = vmatpush1.msra.mxu1 %v121_v45  ;;  %v178_v1 = vld [vmem:[#allocation5 + $0x3d0] sm:$0xff]  ;;  %v177_v3 = vld [vmem:[#allocation5 + $0x3c8] sm:$0xff]  ;;  %v68_v6 = vld [vmem:[#allocation5 + $0x60] sm:$0xff] }
  0x40   :  { %270 = vmatpush1.msra.mxu0 %v101_v34  ;;  %344 = vmatprep.subr.mxu1 %v113_v47  ;;  %v169_v5 = vld [vmem:[#allocation5 + $0x388] sm:$0xff]  ;;  %v168_v7 = vld [vmem:[#allocation5 + $0x380] sm:$0xff]  ;;  %v67_v8 = vld [vmem:[#allocation5 + $0x58] sm:$0xff] }
  0x41   :  { %271 = vmatprep.subr.mxu0 %v93_v36  ;;  %345 = vmatpush1.msra.mxu1 %v112_v49  ;;  %v160_v9 = vld [vmem:[#allocation5 + $0x340] sm:$0xff]  ;;  %v59_v10 = vld [vmem:[#allocation5 + $0x18] sm:$0xff]  ;;  %v58_v12 = vld [vmem:[#allocation5 + $0x10] sm:$0xff] }
  0x42   :  { %272 = vmatpush1.msra.mxu0 %v92_v38  ;;  %346 = vmatprep.subr.mxu1 %v104_v51  ;;  %v159_v11 = vld [vmem:[#allocation5 + $0x338] sm:$0xff]  ;;  %v150_v14 = vld [vmem:[#allocation5 + $0x2f0] sm:$0xff]  ;;  %v141_v18 = vld [vmem:[#allocation5 + $0x2a8] sm:$0xff] }
  0x43   :  { %273 = vmatprep.subr.mxu0 %v84_v40  ;;  %347 = vmatpush1.msra.mxu1 %v103_v53  ;;  %v151_v13 = vld [vmem:[#allocation5 + $0x2f8] sm:$0xff]  ;;  %v198_v15 = vld [vmem:[#allocation5 + $0x470] sm:$0xff]  ;;  %v133_v19 = vld [vmem:[#allocation5 + $0x268] sm:$0xff] }
  0x44   :  { %274 = vmatpush1.msra.mxu0 %v83_v42  ;;  %348 = vmatprep.subr.mxu1 %v95_v55  ;;  %v142_v16 = vld [vmem:[#allocation5 + $0x2b0] sm:$0xff]  ;;  %v863_v17 = vld [vmem:[#allocation2 + $0x8] sm:$0xff]  ;;  %v197_v20 = vld [vmem:[#allocation5 + $0x468] sm:$0xff] }
  0x45   :  { %275 = vmatprep.subr.mxu0 %v75_v44  ;;  %349 = vmatpush1.msra.mxu1 %v94_v59  ;;  %v132_v21 = vld [vmem:[#allocation5 + $0x260] sm:$0xff]  ;;  %v189_v22 = vld [vmem:[#allocation5 + $0x428] sm:$0xff]  ;;  %v123_v25 = vld [vmem:[#allocation5 + $0x218] sm:$0xff] }
  0x46   :  { %276 = vmatpush1.msra.mxu0 %v74_v46  ;;  %350 = vmatprep.subr.mxu1 %v86_v61  ;;  %v124_v23 = vld [vmem:[#allocation5 + $0x220] sm:$0xff]  ;;  %v115_v27 = vld [vmem:[#allocation5 + $0x1d8] sm:$0xff]  ;;  %v114_v28 = vld [vmem:[#allocation5 + $0x1d0] sm:$0xff] }
  0x47   :  { %277 = vmatprep.subr.mxu0 %v66_v48  ;;  %351 = vmatpush1.msra.mxu1 %v85_v63  ;;  %v188_v24 = vld [vmem:[#allocation5 + $0x420] sm:$0xff]  ;;  %v179_v29 = vld [vmem:[#allocation5 + $0x3d8] sm:$0xff]  ;;  %v106_v30 = vld [vmem:[#allocation5 + $0x190] sm:$0xff] }
  0x48   :  { %278 = vmatpush1.msra.mxu0 %v65_v50  ;;  %352 = vmatprep.subr.mxu1 %v77_v2  ;;  %v180_v26 = vld [vmem:[#allocation5 + $0x3e0] sm:$0xff]  ;;  %v171_v31 = vld [vmem:[#allocation5 + $0x398] sm:$0xff]  ;;  %v105_v32 = vld [vmem:[#allocation5 + $0x188] sm:$0xff] }
  0x49   :  { %279 = vmatprep.subr.mxu0 %v57_v52  ;;  %353 = vmatpush1.msra.mxu1 %v76_v4  ;;  %v170_v33 = vld [vmem:[#allocation5 + $0x390] sm:$0xff]  ;;  %v97_v34 = vld [vmem:[#allocation5 + $0x148] sm:$0xff]  ;;  %v96_v36 = vld [vmem:[#allocation5 + $0x140] sm:$0xff] }
  0x4a   :  { %280 = vmatpush1.msra.mxu0 %v56_v54  ;;  %354 = vmatprep.subr.mxu1 %v68_v6  ;;  %v162_v35 = vld [vmem:[#allocation5 + $0x350] sm:$0xff]  ;;  %v161_v37 = vld [vmem:[#allocation5 + $0x348] sm:$0xff]  ;;  %v88_v38 = vld [vmem:[#allocation5 + $0x100] sm:$0xff] }
  0x4b   :  { %314 = vmatmul.mubr.f32.vlgmr.msra.gmra.mxu0 %v860_v56  ;;  %403 = vmatprep.subr.mxu0 %v196_v57  ;;  %v153_v39 = vld [vmem:[#allocation5 + $0x308] sm:$0xff]  ;;  %v87_v40 = vld [vmem:[#allocation5 + $0xf8] sm:$0xff]  ;;  %v152_v41 = vld [vmem:[#allocation5 + $0x300] sm:$0xff] }
  0x4c   :  { %404 = vmatpush1.msra.mxu0 %v195_v58  ;;  %355 = vmatpush1.msra.mxu1 %v67_v8  ;;  %v79_v42 = vld [vmem:[#allocation5 + $0xb8] sm:$0xff]  ;;  %v144_v43 = vld [vmem:[#allocation5 + $0x2c0] sm:$0xff]  ;;  %v78_v44 = vld [vmem:[#allocation5 + $0xb0] sm:$0xff] }
  0x4d   :  { %405 = vmatprep.subr.mxu0 %v187_v60  ;;  %356 = vmatprep.subr.mxu1 %v59_v10  ;;  %v143_v45 = vld [vmem:[#allocation5 + $0x2b8] sm:$0xff]  ;;  %v70_v46 = vld [vmem:[#allocation5 + $0x70] sm:$0xff]  ;;  %v69_v48 = vld [vmem:[#allocation5 + $0x68] sm:$0xff] }
  0x4e   :  { %406 = vmatpush1.msra.mxu0 %v186_v62  ;;  %357 = vmatpush1.msra.mxu1 %v58_v12  ;;  %v135_v47 = vld [vmem:[#allocation5 + $0x278] sm:$0xff]  ;;  %v134_v49 = vld [vmem:[#allocation5 + $0x270] sm:$0xff]  ;;  %v61_v50 = vld [vmem:[#allocation5 + $0x28] sm:$0xff] }
  0x4f   :  { %407 = vmatprep.subr.mxu0 %v178_v1  ;;  %319 = vmatprep.mubr.f32.mxu0 %v824_v0  ;;  %v126_v51 = vld [vmem:[#allocation5 + $0x230] sm:$0xff]  ;;  %v60_v52 = vld [vmem:[#allocation5 + $0x20] sm:$0xff]  ;;  %v125_v53 = vld [vmem:[#allocation5 + $0x228] sm:$0xff] }
  0x50   :  { %408 = vmatpush1.msra.mxu0 %v177_v3  ;;  %480 = vmatprep.subr.mxu1 %v198_v15  ;;  %v199_v54 = vld [vmem:[#allocation5 + $0x478] sm:$0xff]  ;;  %v117_v55 = vld [vmem:[#allocation5 + $0x1e8] sm:$0xff]  ;;  %v190_v57 = vld [vmem:[#allocation5 + $0x430] sm:$0xff] }
  0x51   :  { %409 = vmatprep.subr.mxu0 %v169_v5  ;;  %320 = vmatmul.mubr.f32.gmra.mxu0 %v863_v17  ;;  %v116_v58 = vld [vmem:[#allocation5 + $0x1e0] sm:$0xff]  ;;  %v181_v60 = vld [vmem:[#allocation5 + $0x3e8] sm:$0xff]  ;;  %v107_v61 = vld [vmem:[#allocation5 + $0x198] sm:$0xff] }
  0x52   :  { %410 = vmatpush1.msra.mxu0 %v168_v7  ;;  %391 = vmatmul.mubr.f32.vlgmr.msra.gmra.mxu1 %v860_v56  ;;  %v108_v59 = vld [vmem:[#allocation5 + $0x1a0] sm:$0xff]  ;;  %v99_v62 = vld [vmem:[#allocation5 + $0x158] sm:$0xff]  ;;  %v98_v1 = vld [vmem:[#allocation5 + $0x150] sm:$0xff] }
  0x53   :  { %411 = vmatprep.subr.mxu0 %v160_v9  ;;  %481 = vmatpush1.msra.mxu1 %v197_v20  ;;  %v172_v63 = vld [vmem:[#allocation5 + $0x3a0] sm:$0xff]  ;;  %v90_v2 = vld [vmem:[#allocation5 + $0x110] sm:$0xff]  ;;  %v163_v3 = vld [vmem:[#allocation5 + $0x358] sm:$0xff] }
  0x54   :  { %412 = vmatpush1.msra.mxu0 %v159_v11  ;;  %482 = vmatprep.subr.mxu1 %v189_v22  ;;  %v89_v4 = vld [vmem:[#allocation5 + $0x108] sm:$0xff]  ;;  %v154_v6 = vld [vmem:[#allocation5 + $0x310] sm:$0xff]  ;;  %v80_v7 = vld [vmem:[#allocation5 + $0xc0] sm:$0xff] }
  0x55   :  { %413 = vmatprep.subr.mxu0 %v151_v13  ;;  %483 = vmatpush1.msra.mxu1 %v188_v24  ;;  %v81_v5 = vld [vmem:[#allocation5 + $0xc8] sm:$0xff]  ;;  %v72_v9 = vld [vmem:[#allocation5 + $0x80] sm:$0xff]  ;;  %v71_v11 = vld [vmem:[#allocation5 + $0x78] sm:$0xff] }
  0x56   :  { %414 = vmatpush1.msra.mxu0 %v150_v14  ;;  %484 = vmatprep.subr.mxu1 %v180_v26  ;;  %v145_v8 = vld [vmem:[#allocation5 + $0x2c8] sm:$0xff]  ;;  %v136_v10 = vld [vmem:[#allocation5 + $0x280] sm:$0xff]  ;;  %v63_v12 = vld [vmem:[#allocation5 + $0x38] sm:$0xff] }
  0x57   :  { %415 = vmatprep.subr.mxu0 %v142_v16  ;;  %467 = vmatprep.mubr.f32.mxu0 %v824_v0  ;;  %v127_v13 = vld [vmem:[#allocation5 + $0x238] sm:$0xff]  ;;  %v62_v14 = vld [vmem:[#allocation5 + $0x30] sm:$0xff]  ;;  %v109_v16 = vld [vmem:[#allocation5 + $0x1a8] sm:$0xff] }
  0x58   :  { %416 = vmatpush1.msra.mxu0 %v141_v18  ;;  %485 = vmatpush1.msra.mxu1 %v179_v29  ;;  %v118_v15 = vld [vmem:[#allocation5 + $0x1f0] sm:$0xff]  ;;  %v100_v18 = vld [vmem:[#allocation5 + $0x160] sm:$0xff] }
  0x59   :  { %417 = vmatprep.subr.mxu0 %v133_v19  ;;  %486 = vmatprep.subr.mxu1 %v171_v31  ;;  %v91_v19 = vld [vmem:[#allocation5 + $0x118] sm:$0xff]  ;;  %v82_v20 = vld [vmem:[#allocation5 + $0xd0] sm:$0xff]  ;;  %v64_v22 = vld [vmem:[#allocation5 + $0x40] sm:$0xff] }
  0x5a   :  { %418 = vmatpush1.msra.mxu0 %v132_v21  ;;  %487 = vmatpush1.msra.mxu1 %v170_v33  ;;  %v73_v21 = vld [vmem:[#allocation5 + $0x88] sm:$0xff] }
  0x5b   :  { %419 = vmatprep.subr.mxu0 %v124_v23  ;;  %488 = vmatprep.subr.mxu1 %v162_v35 }
  0x5c   :  { %420 = vmatpush1.msra.mxu0 %v123_v25  ;;  %489 = vmatpush1.msra.mxu1 %v161_v37 }
  0x5d   :  { %421 = vmatprep.subr.mxu0 %v115_v27  ;;  %490 = vmatprep.subr.mxu1 %v153_v39 }
  0x5e   :  { %422 = vmatpush1.msra.mxu0 %v114_v28  ;;  %491 = vmatpush1.msra.mxu1 %v152_v41 }
  0x5f   :  { %423 = vmatprep.subr.mxu0 %v106_v30  ;;  %492 = vmatprep.subr.mxu1 %v144_v43 }
  0x60   :  { %424 = vmatpush1.msra.mxu0 %v105_v32  ;;  %493 = vmatpush1.msra.mxu1 %v143_v45 }
  0x61   :  { %425 = vmatprep.subr.mxu0 %v97_v34  ;;  %494 = vmatprep.subr.mxu1 %v135_v47 }
  0x62   :  { %426 = vmatpush1.msra.mxu0 %v96_v36  ;;  %495 = vmatpush1.msra.mxu1 %v134_v49 }
  0x63   :  { %427 = vmatprep.subr.mxu0 %v88_v38  ;;  %496 = vmatprep.subr.mxu1 %v126_v51 }
  0x64   :  { %428 = vmatpush1.msra.mxu0 %v87_v40  ;;  %497 = vmatpush1.msra.mxu1 %v125_v53 }
  0x65   :  { %429 = vmatprep.subr.mxu0 %v79_v42  ;;  %498 = vmatprep.subr.mxu1 %v117_v55 }
  0x66   :  { %430 = vmatpush1.msra.mxu0 %v78_v44  ;;  %499 = vmatpush1.msra.mxu1 %v116_v58 }
  0x67   :  { %431 = vmatprep.subr.mxu0 %v70_v46  ;;  %500 = vmatprep.subr.mxu1 %v108_v59 }
  0x68   :  { %432 = vmatpush1.msra.mxu0 %v69_v48  ;;  %501 = vmatpush1.msra.mxu1 %v107_v61 }
  0x69   :  { %433 = vmatprep.subr.mxu0 %v61_v50  ;;  %502 = vmatprep.subr.mxu1 %v99_v62 }
  0x6a   :  { %434 = vmatpush1.msra.mxu0 %v60_v52  ;;  %503 = vmatpush1.msra.mxu1 %v98_v1 }
  0x6b   :  { %468 = vmatmul.mubr.f32.vlgmr.msra.gmra.mxu0 %v860_v56  ;;  %687 = vmatprep.subr.mxu0 %v199_v54 }
  0x6c   :  { %688 = vmatpush3.msra.mxu0 %v199_v54  ;;  %504 = vmatprep.subr.mxu1 %v90_v2 }
  0x6d   :  { %689 = vmatprep.subr.mxu0 %v190_v57  ;;  %505 = vmatpush1.msra.mxu1 %v89_v4 }
  0x6e   :  { %690 = vmatpush3.msra.mxu0 %v190_v57  ;;  %506 = vmatprep.subr.mxu1 %v81_v5 }
  0x6f   :  { %691 = vmatprep.subr.mxu0 %v181_v60  ;;  %396 = vmatprep.mubr.f32.mxu1 %v824_v0 }
  0x70   :  { %692 = vmatpush3.msra.mxu0 %v181_v60  ;;  %507 = vmatpush1.msra.mxu1 %v80_v7 }
  0x71   :  { %693 = vmatprep.subr.mxu0 %v172_v63  ;;  %397 = vmatmul.mubr.f32.gmra.mxu1 %v863_v17 }
  0x72   :  { %694 = vmatpush3.msra.mxu0 %v172_v63  ;;  %508 = vmatprep.subr.mxu1 %v72_v9  ;;  %v668_v9 = vld [vmem:[#allocation7 + $0x8] ss:$0 sm:$0xff] }
  0x73   :  { %695 = vmatprep.subr.mxu0 %v163_v3  ;;  %509 = vmatpush1.msra.mxu1 %v71_v11 }
  0x74   :  { %696 = vmatpush3.msra.mxu0 %v163_v3  ;;  %510 = vmatprep.subr.mxu1 %v63_v12 }
  0x75   :  { %697 = vmatprep.subr.mxu0 %v154_v6  ;;  %473 = vmatprep.mubr.f32.mxu0 %v824_v0 }
  0x76   :  { %698 = vmatpush3.msra.mxu0 %v154_v6  ;;  %511 = vmatpush1.msra.mxu1 %v62_v14 }
  0x77   :  { %699 = vmatprep.subr.mxu0 %v145_v8  ;;  %544 = vmatprep.mubr.f32.mxu1 %v824_v0 }
  0x78   :  { %700 = vmatpush3.msra.mxu0 %v145_v8  ;;  %545 = vmatmul.mubr.f32.vlgmr.msra.gmra.mxu1 %v860_v56 }
  0x79   :  { %701 = vmatprep.subr.mxu0 %v136_v10  ;;  %474 = vmatmul.mubr.f32.gmra.mxu0 %v863_v17 }
  0x7a   :  { %702 = vmatpush3.msra.mxu0 %v136_v10  ;;  %550 = vmatprep.mubr.f32.mxu1 %v824_v0  ;;  %v204_v0 = vlaneseq }
  0x7b   :  { %703 = vmatprep.subr.mxu0 %v127_v13  ;;  %719 = vmatprep.mubr.f32.mxu0 %v860_v56  ;;  %v200_v56 = vld [vmem:[#allocation7] sm:$0xff] }
  0x7c   :  { %704 = vmatpush3.msra.mxu0 %v127_v13  ;;  %551 = vmatmul.mubr.f32.gmra.mxu1 %v863_v17  ;;  %v205_v23 = vshrl.u32 %v204_v0, 7 }
  0x7d   :  { %705 = vmatprep.subr.mxu0 %v118_v15 }
  0x7e   :  { %706 = vmatpush3.msra.mxu0 %v118_v15  ;;  %v206_v24 = vsub.s32 0, %v205_v23  ;;  %v210_v25 = vsub.s32 1, %v205_v23  ;;  %v214_v32 = vsub.s32 2, %v205_v23  ;;  %v218_v33 = vsub.s32 3, %v205_v23 }
  0x7f   :  { %707 = vmatprep.subr.mxu0 %v109_v16  ;;  %v222_v43 = vsub.s32 4, %v205_v23  ;;  %v226_v44 = vsub.s32 5, %v205_v23  ;;  %v230_v52 = vsub.s32 6, %v205_v23  ;;  %v234_v55 = vsub.s32 7, %v205_v23 }
  0x80   :  { %708 = vmatpush3.msra.mxu0 %v109_v16  ;;  %v207_v26 = vrot.slane %v200_v56, %v206_v24  ;;  %v211_v27 = vrot.slane %v200_v56, %v210_v25  ;;  %v215_v34 = vrot.slane %v200_v56, %v214_v32  ;;  %v219_v36 = vrot.slane %v200_v56, %v218_v33 }
  0x81   :  { %709 = vmatprep.subr.mxu0 %v100_v18  ;;  %v223_v45 = vrot.slane %v200_v56, %v222_v43  ;;  %v227_v46 = vrot.slane %v200_v56, %v226_v44  ;;  %v231_v58 = vrot.slane %v200_v56, %v230_v52  ;;  %v235_v59 = vrot.slane %v200_v56, %v234_v55 }
  0x82   :  { %710 = vmatpush3.msra.mxu0 %v100_v18 }
  0x83   :  { %711 = vmatprep.subr.mxu0 %v91_v19 }
  0x84   :  { %712 = vmatpush3.msra.mxu0 %v91_v19 }
  0x85   :  { %713 = vmatprep.subr.mxu0 %v82_v20 }
  0x86   :  { %714 = vmatpush3.msra.mxu0 %v82_v20 }
  0x87   :  { %715 = vmatprep.subr.mxu0 %v73_v21 }
  0x88   :  { %716 = vmatpush3.msra.mxu0 %v73_v21 }
  0x89   :  { %717 = vmatprep.subr.mxu0 %v64_v22 }
  0x8a   :  { %718 = vmatpush3.msra.mxu0 %v64_v22 }
  0x8b   :  { %720 = vmatmul.mubr.f32.vlgmr.msra.gmra.mxu0 %v863_v17 }
 0x10b   :  { %v315_v28 = vpop.f32.mrf.mxu0 }
 0x10c   :  { %v316_v29 = vadd.f32 %v315_v28, %v207_v26 }
 0x10d   :  { %v317_v30 = vpop.f32.mrf.mxu0 }
 0x10e   :  { %632 = vst [vmem:[#allocation8] sm:$0xff] %v316_v29  ;;  %v318_v31 = vadd.f32 %v317_v30, %v211_v27 }
 0x110   :  { %633 = vst [vmem:[#allocation8 + $0x8] sm:$0xff] %v318_v31 }
 0x111   :  { %v321_v35 = vpop.f32.mrf.mxu0 }
 0x112   :  { %v322_v37 = vadd.f32 %v321_v35, %v207_v26  ;;  %v392_v17 = vpop.f32.mrf.mxu1 }
 0x113   :  { %v393_v38 = vadd.f32 %v392_v17, %v215_v34  ;;  %v323_v39 = vpop.f32.mrf.mxu0 }
 0x114   :  { %641 = vst [vmem:[#allocation8 + $0x48] sm:$0xff] %v322_v37  ;;  %v324_v40 = vadd.f32 %v323_v39, %v211_v27  ;;  %v394_v41 = vpop.f32.mrf.mxu1 }
 0x115   :  { %634 = vst [vmem:[#allocation8 + $0x10] sm:$0xff] %v393_v38  ;;  %v395_v42 = vadd.f32 %v394_v41, %v219_v36 }
 0x116   :  { %642 = vst [vmem:[#allocation8 + $0x50] sm:$0xff] %v324_v40 }
 0x117   :  { %635 = vst [vmem:[#allocation8 + $0x18] sm:$0xff] %v395_v42 }
 0x12b   :  { %v469_v47 = vpop.f32.mrf.mxu0 }
 0x12c   :  { %v470_v48 = vadd.f32 %v469_v47, %v223_v45 }
 0x12d   :  { %v471_v49 = vpop.f32.mrf.mxu0 }
 0x12e   :  { %636 = vst [vmem:[#allocation8 + $0x20] sm:$0xff] %v470_v48  ;;  %v472_v50 = vadd.f32 %v471_v49, %v227_v46 }
 0x130   :  { %637 = vst [vmem:[#allocation8 + $0x28] sm:$0xff] %v472_v50 }
 0x131   :  { %v398_v51 = vpop.f32.mrf.mxu1 }
 0x132   :  { %v399_v53 = vadd.f32 %v398_v51, %v215_v34 }
 0x133   :  { %v400_v54 = vpop.f32.mrf.mxu1 }
 0x134   :  { %643 = vst [vmem:[#allocation8 + $0x58] sm:$0xff] %v399_v53  ;;  %v401_v57 = vadd.f32 %v400_v54, %v219_v36 }
 0x136   :  { %644 = vst [vmem:[#allocation8 + $0x60] sm:$0xff] %v401_v57 }
 0x138   :  { %v546_v60 = vpop.f32.mrf.mxu1 }
 0x139   :  { %v475_v61 = vpop.f32.mrf.mxu0  ;;  %v547_v62 = vadd.f32 %v546_v60, %v231_v58 }
 0x13a   :  { %v476_v63 = vadd.f32 %v475_v61, %v223_v45  ;;  %v548_v1 = vpop.f32.mrf.mxu1 }
 0x13b   :  { %638 = vst [vmem:[#allocation8 + $0x30] sm:$0xff] %v547_v62  ;;  %v477_v2 = vpop.f32.mrf.mxu0  ;;  %v549_v3 = vadd.f32 %v548_v1, %v235_v59 }
 0x13c   :  { %645 = vst [vmem:[#allocation8 + $0x68] sm:$0xff] %v476_v63  ;;  %v478_v4 = vadd.f32 %v477_v2, %v227_v46  ;;  %v552_v5 = vpop.f32.mrf.mxu1 }
 0x13d   :  { %639 = vst [vmem:[#allocation8 + $0x38] sm:$0xff] %v549_v3  ;;  %v553_v6 = vadd.f32 %v552_v5, %v231_v58 }
 0x13e   :  { %646 = vst [vmem:[#allocation8 + $0x70] sm:$0xff] %v478_v4  ;;  %v554_v7 = vpop.f32.mrf.mxu1 }
 0x13f   :  { %647 = vst [vmem:[#allocation8 + $0x78] sm:$0xff] %v553_v6  ;;  %v555_v8 = vadd.f32 %v554_v7, %v235_v59 }
 0x141   :  { %648 = vst [vmem:[#allocation8 + $0x80] sm:$0xff] %v555_v8 }
 0x14b   :  { %v721_v10 = vpop.f32.mrf.mxu0 }
 0x14c   :  { %v629_v11 = vadd.f32 %v721_v10, %v668_v9 }
 0x14d   :  { %v623_v12 = vpop.f32.mrf.mxu0 }
 0x14e   :  { %649 = vst [vmem:[#allocation8 + $0x88] sm:$0xff] %v629_v11  ;;  %v624_v13 = vadd.f32 %v668_v9, %v623_v12 }
 0x150   :  { %640 = vst [vmem:[#allocation8 + $0x40] sm:$0xff] %v624_v13 }
 0x151   :  { %802 = shalt.err (!%p799_p5)
}
 0x152   :  { %661 = dma.vmem_to_hbm [thread:$0]  %s656_s2, 2304, %s889_s3, [#allocation4], %s818_s15, %s818_s15, %s819_s16  }
 0x153   :  { %815 = dma.done.wait [#allocation4], 2304  }
 0x154   :  { %816 = vsyncadd [#allocation4], 4294964992 }
 0x155   :  { %665 = vsyncpa [#allocation3], 1 }
 0x156   :  { %666 = vsyncpa [#allocation6], 1 }
 0x157   :  { %667 = vsyncpa [#allocation4], 1 }

</bundles_post_ra>
